<compile_context>
chip_gen: v6e
topology: v6e:2x2x1
jax: 0.10.0
libtpu: 0.0.40
codegen_flags: <defaults>
</compile_context>

<pallas_src>
import functools
import math

import jax
import jax.numpy as jnp
from jax.experimental import pallas as pl
from jax.experimental.pallas import tpu as pltpu


def make_positional_encoding(d_model: int, max_len: int, dtype=jnp.float32) -> jax.Array:
    """Sinusoidal table; identical math to the PyTorch module's `pe[:, 0, :]`
    (note: this module uses log(2*max_len), not the canonical log(10000))."""
    position = jnp.arange(max_len, dtype=jnp.float32)[:, None]                     # (L, 1)
    div_term = jnp.exp(jnp.arange(0, d_model, 2, dtype=jnp.float32)
                       * (-math.log(float(2 * max_len)) / d_model))                # (ceil(D/2),)
    ang = position * div_term                                                       # (L, ceil(D/2))
    pe = jnp.zeros((max_len, d_model), dtype=jnp.float32)
    pe = pe.at[:, 0::2].set(jnp.sin(ang))
    n_odd = pe[:, 1::2].shape[1]
    pe = pe.at[:, 1::2].set(jnp.cos(ang)[:, :n_odd])
    return pe.astype(dtype)


def _pos_enc_kernel(seed_ref, x_ref, pe_ref, y_ref, *,
                    rate, deterministic, seq_tile, batch_tile):
    # One grid step = one (batch-tile, seq-tile) slab. Pure streaming add (mem-bound);
    # the dropout hash/select is free VPU filler under the DMAs.
    y = x_ref[...] + pe_ref[...][None, :, :]

    if (not deterministic) and rate > 0.0:
        # Portable counter-based RNG: murmur3-style fmix32 over per-element keys built
        # from GLOBAL (batch, seq, feature) indices + seed -> mask is unique per element
        # and independent of the tiling / grid order.
        # TODO(synk): torch's nn.Dropout RNG stream cannot be bit-matched; this uses a
        # deterministic hash-based mask instead.
        b0 = (pl.program_id(1) * batch_tile).astype(jnp.uint32)
        s0 = (pl.program_id(0) * seq_tile).astype(jnp.uint32)
        shape = y.shape  # (Bt, St, D)
        bi = jax.lax.broadcasted_iota(jnp.int32, shape, 0).astype(jnp.uint32) + b0
        si = jax.lax.broadcasted_iota(jnp.int32, shape, 1).astype(jnp.uint32) + s0
        di = jax.lax.broadcasted_iota(jnp.int32, shape, 2).astype(jnp.uint32)
        h = (seed_ref[0].astype(jnp.uint32)
             + bi * jnp.uint32(0x9E3779B1)
             + si * jnp.uint32(0x85EBCA77)
             + di * jnp.uint32(0xC2B2AE3D))
        h = h ^ (h >> 16)
        h = h * jnp.uint32(0x7FEB352D)
        h = h ^ (h >> 15)
        h = h * jnp.uint32(0x846CA68B)
        h = h ^ (h >> 16)
        # 24-bit uniform -> signed compare (avoids relying on unsigned compare support).
        r24 = (h & jnp.uint32(0x00FFFFFF)).astype(jnp.int32)
        keep_thresh = jnp.int32(min(int(round((1.0 - rate) * (1 << 24))), (1 << 24) - 1))
        scale = jnp.asarray(1.0 / (1.0 - rate), dtype=y.dtype)
        y = jnp.where(r24 < keep_thresh, y * scale, jnp.zeros_like(y))

    y_ref[...] = y.astype(y_ref.dtype)


def _round_up(n: int, m: int) -> int:
    return ((n + m - 1) // m) * m


def _pick_tiles(B: int, S: int, D: int, itemsize: int):
    """~3 MiB x-slab budget; double-buffered x/pe/y working set stays <~20 MiB,
    inside every generation's scoped-VMEM once raised to 32 MiB."""
    budget = 3 * 1024 * 1024
    row_bytes = max(1, D * itemsize)
    max_rows = max(8, budget // row_bytes)
    seq_tile = max(8, min(_round_up(S, 8), (max_rows // 8) * 8))
    if seq_tile >= _round_up(S, 8):
        # Whole sequence fits one block -> spend leftover budget blocking over batch.
        batch_tile = max(1, min(B, max_rows // seq_tile))
    else:
        batch_tile = 1
    return batch_tile, seq_tile


def positional_encoding_forward(x, pe, *, rate=0.1, deterministic=True, seed=0):
    """y = dropout(x + pe[:seq_len]); x: (B, S, D), pe: (max_len, D)."""
    B, S, D = x.shape
    assert pe.shape[0] >= S and pe.shape[1] == D
    itemsize = jnp.dtype(x.dtype).itemsize

    Bt, St = _pick_tiles(B, S, D, itemsize)
    num_s = pl.cdiv(S, St)
    num_b = pl.cdiv(B, Bt)

    # Only the tiny pe table gets padded/copied (to whole seq blocks); x and y stream
    # straight from/to HBM with partial last blocks handled by Pallas masking.
    pe_use = pe[:S].astype(x.dtype)
    pe_rows = num_s * St
    if pe_rows != S:
        pe_use = jnp.pad(pe_use, ((0, pe_rows - S), (0, 0)))

    kernel = functools.partial(_pos_enc_kernel, rate=float(rate),
                               deterministic=bool(deterministic),
                               seq_tile=St, batch_tile=Bt)
    seed_arr = jnp.asarray([seed], dtype=jnp.int32)

    y = pl.pallas_call(
        kernel,
        out_shape=jax.ShapeDtypeStruct((B, S, D), x.dtype),
        grid_spec=pltpu.PrefetchScalarGridSpec(
            num_scalar_prefetch=1,          # dropout seed lives in SMEM
            # seq outer, batch inner: pe's block index is constant across consecutive
            # (inner) steps, so Pallas skips its re-DMA -> pe read from HBM once.
            grid=(num_s, num_b),
            in_specs=[
                pl.BlockSpec((Bt, St, D), lambda s, b, seed: (b, s, 0)),
                pl.BlockSpec((St, D), lambda s, b, seed: (s, 0)),
            ],
            out_specs=pl.BlockSpec((Bt, St, D), lambda s, b, seed: (b, s, 0)),
        ),
        compiler_params=pltpu.CompilerParams(
            # Fully independent grid steps -> both axes sharded freely across cores.
            dimension_semantics=("parallel", "parallel"),
            vmem_limit_bytes=32 * 1024 * 1024,
        ),
    )(seed_arr, x, pe_use)
    return y


if __name__ == "__main__":
    key = jax.random.PRNGKey(0)

    # Small shapes consistent with the module's forward: (batch, seq_len, d_model).
    B, S, D, MAX_LEN, P_DROP = 2, 8, 128, 16, 0.1

    x = jax.random.normal(key, (B, S, D), dtype=jnp.float32)
    pe = make_positional_encoding(D, MAX_LEN)

    # Eval-mode forward (dropout == identity): check against pure JAX reference.
    y = positional_encoding_forward(x, pe, rate=P_DROP, deterministic=True)
    jax.block_until_ready(y)
    y_ref = x + pe[:S][None, :, :]
    assert y.shape == (B, S, D)
    assert jnp.allclose(y, y_ref, atol=1e-6, rtol=1e-6)

    # Training-mode forward (fused inverted dropout): structural checks only.
    y_tr = positional_encoding_forward(x, pe, rate=P_DROP, deterministic=False, seed=123)
    jax.block_until_ready(y_tr)
    assert y_tr.shape == (B, S, D)
    assert bool(jnp.all(jnp.isfinite(y_tr)))
    kept = y_tr != 0.0
    scale = 1.0 / (1.0 - P_DROP)
    assert jnp.allclose(jnp.where(kept, y_tr, 0.0),
                        jnp.where(kept, y_ref * scale, 0.0),
                        atol=1e-5, rtol=1e-5)

    print("KERNEL_OK")
</pallas_src>

<mosaic_0001>
module attributes {stable_mosaic.version = 11 : i64} {
  func.func @_pos_enc_kernel(%arg0: i32, %arg1: i32, %arg2: memref<1xi32, #tpu.memory_space<smem>>, %arg3: memref<2x8x128xf32, #tpu.memory_space<vmem>>, %arg4: memref<8x128xf32, #tpu.memory_space<vmem>>, %arg5: memref<2x8x128xf32, #tpu.memory_space<vmem>>) attributes {dimension_semantics = [#tpu.dimension_semantics<parallel>, #tpu.dimension_semantics<parallel>], iteration_bounds = array<i64: 1, 1>, scalar_prefetch = 1 : i64, scratch_operands = 0 : i64, tpu.core_type = #tpu.core_type<tc>, window_params = [{transform_indices = @transform_0, window_bounds = array<i64: 2, 8, 128>}, {transform_indices = @transform_1, window_bounds = array<i64: 8, 128>}, {transform_indices = @transform_2, window_bounds = array<i64: 2, 8, 128>}]} {
    %c0 = arith.constant 0 : index
    %c0_0 = arith.constant 0 : index
    %c0_1 = arith.constant 0 : index
    %0 = vector.load %arg3[%c0, %c0_0, %c0_1] : memref<2x8x128xf32, #tpu.memory_space<vmem>>, vector<2x8x128xf32>
    %c0_2 = arith.constant 0 : index
    %c0_3 = arith.constant 0 : index
    %1 = vector.load %arg4[%c0_2, %c0_3] : memref<8x128xf32, #tpu.memory_space<vmem>>, vector<8x128xf32>
    %2 = vector.shape_cast %1 : vector<8x128xf32> to vector<1x8x128xf32>
    %3 = vector.broadcast %2 : vector<1x8x128xf32> to vector<2x8x128xf32>
    %4 = arith.addf %0, %3 : vector<2x8x128xf32>
    %c0_4 = arith.constant 0 : index
    %c0_5 = arith.constant 0 : index
    %c0_6 = arith.constant 0 : index
    %5 = vector.load %arg5[%c0_4, %c0_5, %c0_6] : memref<2x8x128xf32, #tpu.memory_space<vmem>>, vector<2x8x128xf32>
    tpu.vector_store %arg5[%c0_4, %c0_5, %c0_6], %4 {strides = array<i32>} : memref<2x8x128xf32, #tpu.memory_space<vmem>>, vector<2x8x128xf32>,
    return
  }
  func.func @transform_0(%arg0: i32, %arg1: i32, %arg2: memref<1xi32, #tpu.memory_space<smem>>) -> (i32, i32, i32) {
    %c0_i32 = arith.constant 0 : i32
    %c0_i32_0 = arith.constant 0 : i32
    return %arg1, %arg0, %c0_i32 : i32, i32, i32
  }
  func.func @transform_1(%arg0: i32, %arg1: i32, %arg2: memref<1xi32, #tpu.memory_space<smem>>) -> (i32, i32) {
    %c0_i32 = arith.constant 0 : i32
    %c0_i32_0 = arith.constant 0 : i32
    return %arg0, %c0_i32 : i32, i32
  }
  func.func @transform_2(%arg0: i32, %arg1: i32, %arg2: memref<1xi32, #tpu.memory_space<smem>>) -> (i32, i32, i32) {
    %c0_i32 = arith.constant 0 : i32
    %c0_i32_0 = arith.constant 0 : i32
    return %arg1, %arg0, %c0_i32 : i32, i32, i32
  }
}

</mosaic_0001>

<bundles_post_ra>
// kernel: tpu_custom_call.1
= control target key start
LH: loop header
LB: loop body
LE: loop exit
PB: predicated region body
PF: predicated region fallthrough
CT: control target
= control target key end

     0   :  { %9 = vsyncpa [#allocation5], 0  ;;  %s176_s0 = inlined_call_operand.<no memory space> [shape: s32[1], index: 0, kind: input, shape index: {}]   ;;  %s177_s1 = inlined_call_operand.hbm [shape: f32[2,8,128], index: 1, kind: input, shape index: {}]   ;;  %s178_s2 = inlined_call_operand.hbm [shape: f32[8,128], index: 2, kind: input, shape index: {}]   ;;  %s179_s3 = inlined_call_operand.hbm [shape: f32[2,8,128], index: 3, kind: output, shape index: {}]  }
   0x1   :  { %10 = vsyncpa [#allocation8], 0 }
   0x2   :  { %11 = vsyncpa [#allocation6], 0  ;;  %s136_s12 = smov [#allocation4]  }
   0x3   :  { %s17_s13 = sshll.u32 %s136_s12, 4  ;;  %s18_s13 = int_to_ptr.vmem [resolvable:$true] %s17_s13 }
   0x4   :  { %s78_s14 = scalar_lea.vmem %s18_s13, 256  ;;  %p83_p1 = scmp.lt.s32.totalorder %s18_s13, %s18_s13 }
   0x5   :  { %p79_p0 = scmp.ne.s32.totalorder %s18_s13, %s78_s14  ;;  %p84_p2 = scmp.lt.s32.totalorder %s78_s14, %s78_s14 }
   0x7   :  { %p85_p3 = por %p84_p2, %p83_p1 }
   0x9   :  { %p86_p4 = pnand %p85_p3, %p79_p0 }
   0xb   :  { %89 = shalt.err (!%p86_p4)
}
   0xc   :  { %s137_s0 = smov 128   ;;  %s138_s15 = smov 8  }
   0xd   :  { %23 = dma.hbm_to_vmem [thread:$0]  %s177_s1, 256, %s18_s13, [#allocation5], %s137_s0, %s137_s0, %s138_s15  }
   0xe   :  { %s139_s18 = smov [#allocation7]  }
   0xf   :  { %s30_s19 = sshll.u32 %s139_s18, 4  ;;  %s31_s19 = int_to_ptr.vmem [resolvable:$true] %s30_s19 }
  0x10   :  { %s98_s20 = scalar_lea.vmem %s31_s19, 128  ;;  %p103_p6 = scmp.lt.s32.totalorder %s31_s19, %s31_s19 }
  0x11   :  { %p99_p5 = scmp.ne.s32.totalorder %s31_s19, %s98_s20  ;;  %p104_p7 = scmp.lt.s32.totalorder %s98_s20, %s98_s20 }
  0x13   :  { %p105_p8 = por %p104_p7, %p103_p6 }
  0x15   :  { %p106_p9 = pnand %p105_p8, %p99_p5 }
  0x17   :  { %109 = shalt.err (!%p106_p9)
}
  0x18   :  { %33 = dma.hbm_to_vmem [thread:$0]  %s178_s2, 128, %s31_s19, [#allocation8]  }
  0x19   :  { %130 = dma.done.wait [#allocation5], 256  }
  0x1a   :  { %131 = vsyncadd [#allocation5], 4294967040 }
  0x1b   :  { %132 = dma.done.wait [#allocation8], 128  }
  0x1c   :  { %133 = vsyncadd [#allocation8], 4294967168  ;;  %s140_s23 = smov [#allocation9]   ;;  %v40_v0 = vld [vmem:[#allocation4] sm:$0xff]  ;;  %v42_v1 = vld [vmem:[#allocation7] sm:$0xff] }
  0x1d   :  { %s52_s1 = sshll.u32 %s140_s23, 4  ;;  %v41_v2 = vld [vmem:[#allocation4 + $0x8] sm:$0xff]  ;;  %v43_v3 = vadd.f32 %v42_v1, %v40_v0  ;;  %s53_s1 = int_to_ptr.vmem [resolvable:$true] %s52_s1 }
  0x1e   :  { %v44_v4 = vadd.f32 %v42_v1, %v41_v2  ;;  %s110_s24 = scalar_lea.vmem %s53_s1, 256  ;;  %p115_p11 = scmp.lt.s32.totalorder %s53_s1, %s53_s1 }
  0x1f   :  { %45 = vst [vmem:[#allocation9] sm:$0xff] %v43_v3  ;;  %p111_p10 = scmp.ne.s32.totalorder %s53_s1, %s110_s24  ;;  %p116_p12 = scmp.lt.s32.totalorder %s110_s24, %s110_s24 }
  0x20   :  { %46 = vst [vmem:[#allocation9 + $0x8] sm:$0xff] %v44_v4 }
  0x21   :  { %p117_p13 = por %p116_p12, %p115_p11 }
  0x23   :  { %p118_p0 = pnand %p117_p13, %p111_p10 }
  0x25   :  { %121 = shalt.err (!%p118_p0)
}
  0x26   :  { %58 = dma.vmem_to_hbm [thread:$0]  %s53_s1, 256, %s179_s3, [#allocation6], %s137_s0, %s137_s0, %s138_s15  }
  0x27   :  { %134 = dma.done.wait [#allocation6], 256  }
  0x28   :  { %135 = vsyncadd [#allocation6], 4294967040 }
  0x29   :  { %62 = vsyncpa [#allocation5], 1 }
  0x2a   :  { %63 = vsyncpa [#allocation8], 1 }
  0x2b   :  { %64 = vsyncpa [#allocation6], 1 }

</bundles_post_ra>
